<compile_context>
chip_gen: v6e
topology: v6e:2x2x1
jax: 0.10.0
libtpu: 0.0.40
codegen_flags: <defaults>
</compile_context>

<pallas_src>
import math

import jax
import jax.numpy as jnp
from jax.experimental import pallas as pl
from jax.experimental.pallas import tpu as pltpu


# ---------------------------------------------------------------------------
# Pallas kernel: gather one chunk of T rows from the VMEM-resident table.
# ---------------------------------------------------------------------------
def _embed_chunk_kernel(ids_ref, table_ref, o_ref):
    """ids_ref  : (M_pad,) int32 token ids, scalar-prefetched into SMEM.
       table_ref: (V, E)   pre-scaled table, VMEM-resident (constant index_map).
       o_ref    : (T, E)   output block; T % 8 == 0, E % 128 == 0 (full vst)."""
    T = o_ref.shape[0]
    base = pl.program_id(0) * T
    # Static Python loop (T is a trace-time constant): per-row in-VMEM copy.
    for t in range(T):
        tok = ids_ref[base + t]                              # dynamic SMEM read
        o_ref[pl.ds(t, 1), :] = table_ref[pl.ds(tok, 1), :]  # (1, E) row copy


def embedding_lookup(ids_flat, table, chunk_tokens=128):
    """ids_flat: (M,) int32 token ids; table: (V, E) f32 (pre-scaled).

    Returns (M, E) = table[ids_flat, :].
    """
    (M,) = ids_flat.shape
    V, E = table.shape

    # Chunk size: sublane-full (multiple of 8); shrink for tiny inputs so the grid
    # has >= 2 steps (lets v7x's two TensorCores both get work via "parallel").
    T = chunk_tokens
    while T > 8 and pl.cdiv(M, T) < 2:
        T //= 2
    T = max(T, 8)

    num_chunks = pl.cdiv(M, T)
    M_pad = num_chunks * T
    if M_pad != M:
        # Pad with token id 0 (always in range); padded rows are dropped below.
        ids_flat = jnp.pad(ids_flat, (0, M_pad - M))

    # Explicit VMEM budget: resident table (allow double-buffer) + double-buffered
    # output chunks + headroom, capped for v7x's 64 MiB physical VMEM.
    itemsize = jnp.dtype(table.dtype).itemsize
    table_bytes = V * E * itemsize
    chunk_bytes = T * E * itemsize
    vmem_limit = min(max(2 * table_bytes + 4 * chunk_bytes + (4 << 20), 16 << 20),
                     64 << 20)

    out = pl.pallas_call(
        _embed_chunk_kernel,
        out_shape=jax.ShapeDtypeStruct((M_pad, E), table.dtype),
        grid_spec=pltpu.PrefetchScalarGridSpec(
            num_scalar_prefetch=1,            # token ids -> SMEM
            grid=(num_chunks,),               # one grid step per chunk of T tokens
            in_specs=[
                # Full table, constant index_map: one bulk HBM->VMEM transfer,
                # then resident for every grid step; rows gathered in-VMEM.
                pl.BlockSpec((V, E), lambda i, ids: (0, 0)),
            ],
            out_specs=pl.BlockSpec((T, E), lambda i, ids: (i, 0)),
        ),
        compiler_params=pltpu.CompilerParams(
            dimension_semantics=("parallel",),
            vmem_limit_bytes=vmem_limit,
        ),
    )(ids_flat, table)
    return out[:M]


# ---------------------------------------------------------------------------
# Module wrapper (mirrors Embeddings.forward)
# ---------------------------------------------------------------------------
class EmbeddingsPallas:
    def __init__(self, d_model, vocab, rng_key):
        self.d_model = d_model
        self.vocab = vocab
        # nn.Embedding default init: weight ~ N(0, 1).
        self.lut_weight = jax.random.normal(rng_key, (vocab, d_model), jnp.float32)
        # Fold sqrt(d_model) into the stored table once (bit-identical to scaling
        # each looked-up row at runtime). The unscaled weight is kept separately
        # in case it is tied/shared with an output projection elsewhere.
        scale = jnp.float32(math.sqrt(d_model))
        self._table = self.lut_weight * scale
        # Kept in f32 so the result matches the f32 reference to 1e-6.
        # TODO(synk): use bf16 table/output on bandwidth-poor v5e (and to halve the
        #             resident-VMEM footprint for large vocabs on v7x).

    def __call__(self, x):
        """x: integer token ids of shape (B, S). Returns (B, S, d_model)."""
        ids = jnp.asarray(x, jnp.int32)
        # Guard untrusted ids: avoid out-of-range in-VMEM row reads.
        ids = jnp.clip(ids, 0, self.vocab - 1)
        ids_flat = ids.reshape(-1)
        out_flat = embedding_lookup(ids_flat, self._table)
        return out_flat.reshape(*ids.shape, self.d_model)


# ---------------------------------------------------------------------------
# Pure-JAX reference (mirrors the torch forward semantics)
# ---------------------------------------------------------------------------
def reference_embeddings(x, lut_weight, d_model):
    return lut_weight[x] * math.sqrt(d_model)


# ---------------------------------------------------------------------------
if __name__ == "__main__":
    d_model, vocab = 512, 1000   # values from the reference script
    B, S = 2, 8                  # small batch/seq

    root = jax.random.PRNGKey(0)
    k_param, k_ids = jax.random.split(root)

    emb = EmbeddingsPallas(d_model, vocab, k_param)
    x = jax.random.randint(k_ids, (B, S), 0, vocab, dtype=jnp.int32)

    out = jax.block_until_ready(emb(x))

    ref = reference_embeddings(x, emb.lut_weight, d_model)
    assert out.shape == (B, S, d_model)
    assert bool(jnp.allclose(out, ref, atol=1e-6, rtol=1e-6)), "embedding mismatch"

    print("KERNEL_OK")
</pallas_src>

<mosaic_0001>
module attributes {stable_mosaic.version = 11 : i64} {
  func.func @_embed_chunk_kernel(%arg0: i32, %arg1: memref<16xi32, #tpu.memory_space<smem>>, %arg2: memref<1000x512xf32, #tpu.memory_space<vmem>>, %arg3: memref<8x512xf32, #tpu.memory_space<vmem>>) attributes {dimension_semantics = [#tpu.dimension_semantics<parallel>], iteration_bounds = array<i64: 2>, scalar_prefetch = 1 : i64, scratch_operands = 0 : i64, tpu.core_type = #tpu.core_type<tc>, window_params = [{pipeline_mode = #tpu.pipeline_mode<synchronous>, transform_indices = @transform_0, window_bounds = array<i64: 1000, 512>}, {transform_indices = @transform_1, window_bounds = array<i64: 8, 512>}]} {
    %c8_i32 = arith.constant 8 : i32
    %0 = arith.muli %arg0, %c8_i32 : i32
    %c0_i32 = arith.constant 0 : i32
    %1 = arith.addi %0, %c0_i32 : i32
    %2 = arith.index_cast %1 : i32 to index
    %3 = memref.load %arg1[%2] : memref<16xi32, #tpu.memory_space<smem>>
    %4 = arith.index_cast %3 : i32 to index
    %c0 = arith.constant 0 : index
    %5 = vector.load %arg2[%4, %c0] : memref<1000x512xf32, #tpu.memory_space<vmem>>, vector<1x512xf32>
    %c0_0 = arith.constant 0 : index
    %c0_1 = arith.constant 0 : index
    %6 = vector.load %arg3[%c0_0, %c0_1] : memref<8x512xf32, #tpu.memory_space<vmem>>, vector<1x512xf32>
    tpu.vector_store %arg3[%c0_0, %c0_1], %5 {strides = array<i32>} : memref<8x512xf32, #tpu.memory_space<vmem>>, vector<1x512xf32>,
    %c1_i32 = arith.constant 1 : i32
    %7 = arith.addi %0, %c1_i32 : i32
    %8 = arith.index_cast %7 : i32 to index
    %9 = memref.load %arg1[%8] : memref<16xi32, #tpu.memory_space<smem>>
    %10 = arith.index_cast %9 : i32 to index
    %c0_2 = arith.constant 0 : index
    %11 = vector.load %arg2[%10, %c0_2] : memref<1000x512xf32, #tpu.memory_space<vmem>>, vector<1x512xf32>
    %c1 = arith.constant 1 : index
    %c0_3 = arith.constant 0 : index
    %12 = vector.load %arg3[%c1, %c0_3] : memref<8x512xf32, #tpu.memory_space<vmem>>, vector<1x512xf32>
    tpu.vector_store %arg3[%c1, %c0_3], %11 {strides = array<i32>} : memref<8x512xf32, #tpu.memory_space<vmem>>, vector<1x512xf32>,
    %c2_i32 = arith.constant 2 : i32
    %13 = arith.addi %0, %c2_i32 : i32
    %14 = arith.index_cast %13 : i32 to index
    %15 = memref.load %arg1[%14] : memref<16xi32, #tpu.memory_space<smem>>
    %16 = arith.index_cast %15 : i32 to index
    %c0_4 = arith.constant 0 : index
    %17 = vector.load %arg2[%16, %c0_4] : memref<1000x512xf32, #tpu.memory_space<vmem>>, vector<1x512xf32>
    %c2 = arith.constant 2 : index
    %c0_5 = arith.constant 0 : index
    %18 = vector.load %arg3[%c2, %c0_5] : memref<8x512xf32, #tpu.memory_space<vmem>>, vector<1x512xf32>
    tpu.vector_store %arg3[%c2, %c0_5], %17 {strides = array<i32>} : memref<8x512xf32, #tpu.memory_space<vmem>>, vector<1x512xf32>,
    %c3_i32 = arith.constant 3 : i32
    %19 = arith.addi %0, %c3_i32 : i32
    %20 = arith.index_cast %19 : i32 to index
    %21 = memref.load %arg1[%20] : memref<16xi32, #tpu.memory_space<smem>>
    %22 = arith.index_cast %21 : i32 to index
    %c0_6 = arith.constant 0 : index
    %23 = vector.load %arg2[%22, %c0_6] : memref<1000x512xf32, #tpu.memory_space<vmem>>, vector<1x512xf32>
    %c3 = arith.constant 3 : index
    %c0_7 = arith.constant 0 : index
    %24 = vector.load %arg3[%c3, %c0_7] : memref<8x512xf32, #tpu.memory_space<vmem>>, vector<1x512xf32>
    tpu.vector_store %arg3[%c3, %c0_7], %23 {strides = array<i32>} : memref<8x512xf32, #tpu.memory_space<vmem>>, vector<1x512xf32>,
    %c4_i32 = arith.constant 4 : i32
    %25 = arith.addi %0, %c4_i32 : i32
    %26 = arith.index_cast %25 : i32 to index
    %27 = memref.load %arg1[%26] : memref<16xi32, #tpu.memory_space<smem>>
    %28 = arith.index_cast %27 : i32 to index
    %c0_8 = arith.constant 0 : index
    %29 = vector.load %arg2[%28, %c0_8] : memref<1000x512xf32, #tpu.memory_space<vmem>>, vector<1x512xf32>
    %c4 = arith.constant 4 : index
    %c0_9 = arith.constant 0 : index
    %30 = vector.load %arg3[%c4, %c0_9] : memref<8x512xf32, #tpu.memory_space<vmem>>, vector<1x512xf32>
    tpu.vector_store %arg3[%c4, %c0_9], %29 {strides = array<i32>} : memref<8x512xf32, #tpu.memory_space<vmem>>, vector<1x512xf32>,
    %c5_i32 = arith.constant 5 : i32
    %31 = arith.addi %0, %c5_i32 : i32
    %32 = arith.index_cast %31 : i32 to index
    %33 = memref.load %arg1[%32] : memref<16xi32, #tpu.memory_space<smem>>
    %34 = arith.index_cast %33 : i32 to index
    %c0_10 = arith.constant 0 : index
    %35 = vector.load %arg2[%34, %c0_10] : memref<1000x512xf32, #tpu.memory_space<vmem>>, vector<1x512xf32>
    %c5 = arith.constant 5 : index
    %c0_11 = arith.constant 0 : index
    %36 = vector.load %arg3[%c5, %c0_11] : memref<8x512xf32, #tpu.memory_space<vmem>>, vector<1x512xf32>
    tpu.vector_store %arg3[%c5, %c0_11], %35 {strides = array<i32>} : memref<8x512xf32, #tpu.memory_space<vmem>>, vector<1x512xf32>,
    %c6_i32 = arith.constant 6 : i32
    %37 = arith.addi %0, %c6_i32 : i32
    %38 = arith.index_cast %37 : i32 to index
    %39 = memref.load %arg1[%38] : memref<16xi32, #tpu.memory_space<smem>>
    %40 = arith.index_cast %39 : i32 to index
    %c0_12 = arith.constant 0 : index
    %41 = vector.load %arg2[%40, %c0_12] : memref<1000x512xf32, #tpu.memory_space<vmem>>, vector<1x512xf32>
    %c6 = arith.constant 6 : index
    %c0_13 = arith.constant 0 : index
    %42 = vector.load %arg3[%c6, %c0_13] : memref<8x512xf32, #tpu.memory_space<vmem>>, vector<1x512xf32>
    tpu.vector_store %arg3[%c6, %c0_13], %41 {strides = array<i32>} : memref<8x512xf32, #tpu.memory_space<vmem>>, vector<1x512xf32>,
    %c7_i32 = arith.constant 7 : i32
    %43 = arith.addi %0, %c7_i32 : i32
    %44 = arith.index_cast %43 : i32 to index
    %45 = memref.load %arg1[%44] : memref<16xi32, #tpu.memory_space<smem>>
    %46 = arith.index_cast %45 : i32 to index
    %c0_14 = arith.constant 0 : index
    %47 = vector.load %arg2[%46, %c0_14] : memref<1000x512xf32, #tpu.memory_space<vmem>>, vector<1x512xf32>
    %c7 = arith.constant 7 : index
    %c0_15 = arith.constant 0 : index
    %48 = vector.load %arg3[%c7, %c0_15] : memref<8x512xf32, #tpu.memory_space<vmem>>, vector<1x512xf32>
    tpu.vector_store %arg3[%c7, %c0_15], %47 {strides = array<i32>} : memref<8x512xf32, #tpu.memory_space<vmem>>, vector<1x512xf32>,
    return
  }
  func.func @transform_0(%arg0: i32, %arg1: memref<16xi32, #tpu.memory_space<smem>>) -> (i32, i32) {
    %c0_i32 = arith.constant 0 : i32
    %c0_i32_0 = arith.constant 0 : i32
    %c0_i32_1 = arith.constant 0 : i32
    return %c0_i32, %c0_i32_0 : i32, i32
  }
  func.func @transform_1(%arg0: i32, %arg1: memref<16xi32, #tpu.memory_space<smem>>) -> (i32, i32) {
    %c0_i32 = arith.constant 0 : i32
    %c0_i32_0 = arith.constant 0 : i32
    return %arg0, %c0_i32 : i32, i32
  }
}

</mosaic_0001>

<bundles_post_ra>
// kernel: tpu_custom_call.1
= control target key start
LH: loop header
LB: loop body
LE: loop exit
PB: predicated region body
PF: predicated region fallthrough
CT: control target
= control target key end

     0   :  { %s527_s9 = smov [#allocation3]   ;;  %s720_s0 = inlined_call_operand.hbm [shape: s32[16], index: 0, kind: input, shape index: {}]   ;;  %s721_s1 = inlined_call_operand.hbm [shape: f32[1000,512], index: 1, kind: input, shape index: {}]   ;;  %s722_s2 = inlined_call_operand.hbm [shape: f32[16,512], index: 2, kind: output, shape index: {}]  }
   0x1   :  { %8 = dma.hbm_to_smem %s720_s0, 16, %s527_s9, [#allocation2] }
   0x2   :  { %501 = dma.done.wait [#allocation2], 16 }
   0x3   :  { %502 = vsyncadd [#allocation2], 4294967280 }
   0x4   :  { %10 = sfence }
   0x5   :  { %11 = vsyncpa [#allocation5], 0 }
   0x6   :  { %12 = vsyncpa [#allocation6], 0 }
   0x7   :  { %14 = vsyncpa [#allocation6 + $0x1], 0  ;;  %s550_s12 = smov 0   ;;  %s552_s13 = smov 0  }
   0x8   :  { %s554_s14 = smov 0   ;;  %s556_s15 = smov 0  }
   0x9 LB: > { %s571_s0 = sadd.s32 4294967295, %s525_s15   ;;  %s328_s16 = sadd.s32 4294967294, %s525_s15   ;;  %s525_s15 = sphi %s556_s15, %s732_s15   ;;  %s521_s14 = sphi %s554_s14, %s731_s14   ;;  %s517_s13 = sphi %s552_s13, %s730_s13   ;;  %s513_s12 = sphi %s550_s12, %s729_s12  }
   0xa   : > { %s575_s17 = sadd.s32 1, %s525_s15   ;;  %s48_s18 = sadd.s32 1, %s521_s14 }
   0xb   : > { %s45_s19 = ssub.s32 %s525_s15, %s575_s17  ;;  %p58_p0 = scmp.ne.s32.totalorder %s521_s14, %s517_s13 }
   0xc   : > { %p46_p1 = scmp.eq.s32.totalorder %s45_s19, 0  ;;  %p59_p2 = scmp.eq.s32.totalorder %s571_s0, 1 }
   0xd   : > { %p64_p3 = scmp.ne.s32.totalorder %s517_s13, %s513_s12  ;;  %p65_p4 = scmp.eq.s32.totalorder %s328_s16, 1 }
   0xe   : > { %s586_s20 = scalar_select %p46_p1, %s521_s14, %s48_s18  }
   0xf   : > { %p588_p5 = por %p59_p2, %p58_p0  ;;  %p592_p6 = por %p65_p4, %p64_p3 }
  0x10   : > { %p329_p7 = scmp.ge.s32.totalorder %s525_s15, 1  ;;  %p72_p8 = scmp.lt.s32.totalorder %s525_s15, 3 }
  0x11   : > { %s724_s22 = scalar_select %p592_p6, 1, 0 }
  0x12   : > { %p386_p9 = scmp.eq.s32.totalorder %s571_s0, 0  ;;  %p599_p10 = pnand %p329_p7, %p72_p8 }
  0x13   : > { %s528_s24 = smov [#allocation4]  }
  0x14   : > { %s84_s25 = sshll.u32 %s528_s24, 4  ;;  %p378_p11 = pneg %p599_p10  ;;  %s85_s25 = int_to_ptr.vmem [resolvable:$true] %s84_s25 }
  0x15   : > { %s444_s26 = scalar_lea.vmem %s85_s25, 64000  ;;  %p452_p3 = scmp.lt.s32.totalorder %s85_s25, %s85_s25 }
  0x16   : > { %p379_p12 = pnand %p386_p9, %p378_p11  ;;  %p445_p0 = scmp.ne.s32.totalorder %s85_s25, %s444_s26 }
  0x17   : > { %p453_p4 = scmp.lt.s32.totalorder %s444_s26, %s444_s26 }
  0x18   : > { %p435_p13 = pneg %p379_p12 }
  0x19   : > { %p454_p6 = por %p453_p4, %p452_p3 }
  0x1a   : > { %p447_p1 = pnand %p445_p0, %p435_p13 }
  0x1c   : > { %p448_p2 = pneg %p447_p1 }
  0x1e   : > { %p455_p7 = pnand %p454_p6, %p448_p2 }
  0x20   : > { %458 = shalt.err (!%p455_p7)
}
  0x21   : > { %s529_s27 = smov 512   ;;  %s530_s28 = smov 32  }
  0x22   : > { %381 = dma.hbm_to_vmem [thread:$0]  (!%p379_p12), %s721_s1, 64000, %s85_s25, [#allocation5], %s529_s27, %s529_s27, %s530_s28  }
  0x23   : > { %100 = sbr.rel (%p599_p10) target bundleno = 96 (0x60), region = 24 }
  0x28   : > { %504 = dma.done.wait (%p386_p9), [#allocation5], 64000  }
  0x29   : > { %506 = vsyncadd (%p386_p9), [#allocation5], 4294903296  ;;  %s112_s3 = sand.u32 1, %s517_s13   ;;  %s618_s4 = sshll.u32 %s571_s0, 3  ;;  %v126_v0 = vlaneseq }
  0x2a   : > { %s333_s5 = sshll.u32 %s112_s3, 5  ;;  %s116_s6 = sld [smem:[#allocation3 + %s618_s4]] }
  0x2b   : > { %s132_s7 = sadd.s32 1, %s618_s4  ;;  %s146_s8 = sadd.s32 2, %s618_s4  ;;  %vm632_vm0 = vcmp.lt.s32.totalorder %v126_v0, 512 }
  0x2c   : > { %s133_s9 = sld [smem:[#allocation3 + %s132_s7]]  ;;  %s160_s10 = sadd.s32 3, %s618_s4 }
  0x2d   : > { %s147_s11 = sld [smem:[#allocation3 + %s146_s8]]  ;;  %s174_s16 = sadd.s32 4, %s618_s4 }
  0x2e   : > { %s627_s18 = sld [smem:[#allocation3 + %s160_s10]]  ;;  %s188_s19 = sadd.s32 5, %s618_s4 }
  0x2f   : > { %s630_s26 = sld [smem:[#allocation3 + %s174_s16]]  ;;  %s638_s10 = scalar_lea.vmem [#allocation7], %s333_s5 }
  0x30   : > { %s117_s23 = sshra.s32 %s116_s6, 3  ;;  %s120_s24 = sand.u32 7, %s116_s6 }
  0x31   : > { %s363_s25 = sshll.u32 %s117_s23, 5  ;;  %s636_s28 = sld [smem:[#allocation3 + %s188_s19]] }
  0x32   : > { %s123_s27 = sadd.s32 %s363_s25, %s120_s24  ;;  %s134_s29 = sshra.s32 %s133_s9, 3 }
  0x33   : > { %s124_s30 = scalar_lea.vmem [#allocation4], %s123_s27  ;;  %s137_s7 = sand.u32 7, %s133_s9 }
  0x34   : > { %v125_v2 = vld [vmem:[%s124_s30] ss:$8 sm:$0xf]  ;;  %s364_s8 = sshll.u32 %s134_s29, 5  ;;  %s148_s16 = sshra.s32 %s147_s11, 3 }
  0x35   : > { %130 = vst.msk [vmem:[%s638_s10] ss:$8 sm:$0xf] %vm632_vm0, %v125_v2  ;;  %s140_s6 = sadd.s32 %s364_s8, %s137_s7  ;;  %s151_s19 = sand.u32 7, %s147_s11 }
  0x36   : > { %s141_s23 = scalar_lea.vmem [#allocation4], %s140_s6  ;;  %s365_s24 = sshll.u32 %s148_s16, 5 }
  0x37   : > { %v142_v3 = vld [vmem:[%s141_s23] ss:$8 sm:$0xf]  ;;  %s162_s9 = sshra.s32 %s627_s18, 3  ;;  %s154_s5 = sadd.s32 %s365_s24, %s151_s19 }
  0x38   : > { %339 = vst.msk [vmem:[%s638_s10 + $0x1] ss:$8 sm:$0xf] %vm632_vm0, %v142_v3  ;;  %s165_s25 = sand.u32 7, %s627_s18  ;;  %s366_s27 = sshll.u32 %s162_s9, 5 }
  0x39   : > { %s155_s29 = scalar_lea.vmem [#allocation4], %s154_s5  ;;  %s168_s30 = sadd.s32 %s366_s27, %s165_s25 }
  0x3a   : > { %v156_v4 = vld [vmem:[%s155_s29] ss:$8 sm:$0xf]  ;;  %s176_s7 = sshra.s32 %s630_s26, 3  ;;  %s179_s11 = sand.u32 7, %s630_s26 }
  0x3b   : > { %342 = vst.msk [vmem:[%s638_s10 + $0x2] ss:$8 sm:$0xf] %vm632_vm0, %v156_v4  ;;  %s169_s8 = scalar_lea.vmem [#allocation4], %s168_s30  ;;  %s367_s6 = sshll.u32 %s176_s7, 5 }
  0x3c   : > { %v170_v5 = vld [vmem:[%s169_s8] ss:$8 sm:$0xf]  ;;  %s190_s16 = sshra.s32 %s636_s28, 3  ;;  %s182_s18 = sadd.s32 %s367_s6, %s179_s11 }
  0x3d   : > { %345 = vst.msk [vmem:[%s638_s10 + $0x3] ss:$8 sm:$0xf] %vm632_vm0, %v170_v5  ;;  %s193_s19 = sand.u32 7, %s636_s28  ;;  %s368_s23 = sshll.u32 %s190_s16, 5 }
  0x3e   : > { %s183_s24 = scalar_lea.vmem [#allocation4], %s182_s18  ;;  %s196_s9 = sadd.s32 %s368_s23, %s193_s19 }
  0x3f   : > { %v184_v6 = vld [vmem:[%s183_s24] ss:$8 sm:$0xf]  ;;  %s202_s5 = sadd.s32 6, %s618_s4  ;;  %s197_s25 = scalar_lea.vmem [#allocation4], %s196_s9 }
  0x40   : > { %348 = vst.msk [vmem:[%s638_s10 + $0x4] ss:$8 sm:$0xf] %vm632_vm0, %v184_v6  ;;  %s203_s26 = sld [smem:[#allocation3 + %s202_s5]]  ;;  %s216_s27 = sadd.s32 7, %s618_s4 }
  0x41   : > { %v198_v7 = vld [vmem:[%s197_s25] ss:$8 sm:$0xf]  ;;  %s217_s29 = sld [smem:[#allocation3 + %s216_s27]]  ;;  %s371_s30 = sshll.u32 %s571_s0, 9 }
  0x42   : > { %351 = vst.msk [vmem:[%s638_s10 + $0x5] ss:$8 sm:$0xf] %vm632_vm0, %v198_v7  ;;  %s245_s8 = sshll.u32 %s638_s10, 4  ;;  %s674_s0 = scalar_lea.hbm %s722_s2, %s371_s30  ;;  %s676_s8 = int_to_ptr.vmem [resolvable:$true] %s245_s8 }
  0x43   : > { %s459_s25 = scalar_lea.vmem %s676_s8, 512  ;;  %s531_s27 = smov [#allocation7]  }
  0x44   : > { %p460_p6 = scmp.ne.s32.totalorder %s676_s8, %s459_s25 }
  0x46   : > { %s204_s28 = sshra.s32 %s203_s26, 3  ;;  %s207_s7 = sand.u32 7, %s203_s26 }
  0x47   : > { %s369_s11 = sshll.u32 %s204_s28, 5  ;;  %s218_s16 = sshra.s32 %s217_s29, 3 }
  0x48   : > { %s210_s6 = sadd.s32 %s369_s11, %s207_s7  ;;  %s221_s18 = sand.u32 7, %s217_s29 }
  0x49   : > { %s211_s19 = scalar_lea.vmem [#allocation4], %s210_s6  ;;  %s370_s23 = sshll.u32 %s218_s16, 5 }
  0x4a   : > { %v212_v8 = vld [vmem:[%s211_s19] ss:$8 sm:$0xf]  ;;  %s224_s4 = sadd.s32 %s370_s23, %s221_s18  ;;  %s231_s26 = scalar_lea.sflag [#allocation6], %s112_s3 }
  0x4b   : > { %354 = vst.msk [vmem:[%s638_s10 + $0x6] ss:$8 sm:$0xf] %vm632_vm0, %v212_v8  ;;  %s225_s5 = scalar_lea.vmem [#allocation4], %s224_s4  ;;  %p461_p8 = pnand %p460_p6, %p588_p5 }
  0x4c   : > { %v226_v9 = vld [vmem:[%s225_s5] ss:$8 sm:$0xf]  ;;  %s463_s29 = sshll.u32 %s531_s27, 4  ;;  %s464_s29 = int_to_ptr.vmem [resolvable:$false] %s463_s29 }
  0x4d   : > { %357 = vst.msk [vmem:[%s638_s10 + $0x7] ss:$8 sm:$0xf] %vm632_vm0, %v226_v9  ;;  %p462_p9 = pneg %p461_p8  ;;  %s465_s30 = scalar_lea.vmem %s464_s29, 1024 }
  0x4e   : > { %p466_p10 = scmp.lt.s32.totalorder %s676_s8, %s464_s29  ;;  %p467_p11 = scmp.lt.s32.totalorder %s465_s30, %s459_s25 }
  0x50   : > { %p468_p12 = por %p467_p11, %p466_p10 }
  0x52   : > { %p469_p13 = pnand %p468_p12, %p462_p9 }
  0x54   : > { %472 = shalt.err (!%p469_p13)
}
  0x55   : > { %s473_s10 = scalar_lea.hbm %s674_s0, 512  ;;  %s477_s7 = scalar_lea.hbm %s722_s2, 1024 }
  0x56   : > { %p474_p0 = scmp.ne.s32.totalorder %s674_s0, %s473_s10  ;;  %p478_p3 = scmp.lt.s32.totalorder %s674_s0, %s722_s2 }
  0x57   : > { %p479_p4 = scmp.lt.s32.totalorder %s477_s7, %s473_s10 }
  0x58   : > { %p475_p1 = pnand %p474_p0, %p588_p5 }
  0x59   : > { %p480_p7 = por %p479_p4, %p478_p3 }
  0x5a   : > { %p476_p2 = pneg %p475_p1 }
  0x5c   : > { %p481_p6 = pnand %p480_p7, %p476_p2 }
  0x5e   : > { %484 = shalt.err (!%p481_p6)
}
  0x5f   : > { %376 = dma.vmem_to_hbm [thread:$0]  (%p588_p5), %s676_s8, 512, %s674_s0, %s231_s26  }
  0x60 PF: > { %p388_p8 = scmp.ge.s32.totalorder %s525_s15, 2  ;;  %s257_s16 = sand.u32 1, %s513_s12  }
  0x61   : > { %p728_p9 = scmp.ne.s32.totalorder %s724_s22, 0  ;;  %s258_s18 = scalar_lea.sflag [#allocation6], %s257_s16 }
  0x63   : > { %p383_p10 = pnand %p388_p8, %p728_p9 }
  0x65   : > { %p384_p11 = pneg %p383_p10 }
  0x67   : > { %508 = dma.done.wait (%p384_p11), %s258_s18, 512  }
  0x68   : > { %510 = vsyncadd (%p384_p11), %s258_s18, 4294966784  ;;  %p17_p12 = scmp.ge.s32.totalorder %s575_s17, 4   ;;  %s729_s12 = smov %s517_s13 }
  0x69   : > { %s730_s13 = smov %s521_s14  ;;  %s731_s14 = smov %s586_s20 }
  0x6a   : > { %s732_s15 = smov %s575_s17  ;;  %19 = sbr.rel (!%p17_p12) target bundleno = 9 (0x9), region = 76 }
  0x6f   :  { %263 = vsyncpa [#allocation5], 1 }
  0x70   :  { %265 = vsyncpa [#allocation5 + $0x1], 1 }
  0x71   :  { %266 = vsyncpa [#allocation6], 1 }
  0x72   :  { %268 = vsyncpa [#allocation6 + $0x1], 1 }

</bundles_post_ra>
